<compile_context>
chip_gen: v5e
topology: v5e:2x2
jax: 0.10.0
libtpu: 0.0.40
codegen_flags: <defaults>
</compile_context>

<pallas_src>
import jax
import jax.numpy as jnp
from jax.experimental import pallas as pl
from jax.experimental.pallas import tpu as pltpu

HIDDEN = 104  # fixed by the module definition (nn.Linear(num_features, 104))


def _round_up(n, m):
    return (n + m - 1) // m * m


def _mlp_softmax_kernel(x_ref, w1_ref, b1_ref, w2_ref, b2_ref, o_ref):
    # x_ref:  (TB, F)  bf16     w1_ref: (F, Hp)  bf16    b1_ref: (1, Hp) f32
    # w2_ref: (Hp, Cp) bf16     b2_ref: (1, Cp)  f32     o_ref:  (TB, C) f32
    # layer_1 + ReLU (padded hidden columns have zero weights/bias -> relu(0)=0)
    h = jnp.dot(x_ref[...], w1_ref[...], preferred_element_type=jnp.float32)
    h = jnp.maximum(h + b1_ref[...], 0.0)

    # layer_out (padded class columns carry bias -1e30 -> ~0 softmax weight).
    # Logits / biases stay f32; only the MXU operands are bf16.
    logits = jnp.dot(h.astype(jnp.bfloat16), w2_ref[...],
                     preferred_element_type=jnp.float32) + b2_ref[...]

    # numerically stable softmax over the padded class axis; padded columns
    # contribute exp(-1e30 - m) == 0 so the denominator over real classes is
    # exact.  Exact divide (memory-bound kernel -> cost is hidden under DMA).
    m = jnp.max(logits, axis=-1, keepdims=True)
    e = jnp.exp(logits - m)
    denom = jnp.sum(e, axis=-1, keepdims=True)
    probs = e / denom

    c = o_ref.shape[-1]                       # static real class count
    o_ref[...] = probs[:, :c].astype(o_ref.dtype)


def pytorch_multiclass_forward(x, w1, b1, w2, b2, *, tile_b=None,
                               vmem_limit_bytes=32 * 1024 * 1024):
    """x: [B, F].  w1: [F, 104], b1: [104], w2: [104, C], b2: [C]."""
    B, F = x.shape
    H = w1.shape[1]
    C = w2.shape[1]
    assert w1.shape == (F, H) and b1.shape == (H,)
    assert w2.shape == (H, C) and b2.shape == (C,)

    # --- dtypes: bf16 on the MXU path, f32 biases / logits ---------------------
    x = x.astype(jnp.bfloat16)

    # --- lane-dense padding of the small feature dims (hidden, classes) -------
    Hp = _round_up(H, 128)
    Cp = _round_up(C, 128)
    w1p = jnp.zeros((F, Hp), jnp.bfloat16).at[:, :H].set(w1.astype(jnp.bfloat16))
    b1p = jnp.zeros((1, Hp), jnp.float32).at[0, :H].set(b1.astype(jnp.float32))
    w2p = jnp.zeros((Hp, Cp), jnp.bfloat16).at[:H, :C].set(w2.astype(jnp.bfloat16))
    # padded logits must be driven very negative (NOT zero) so softmax ignores them
    b2p = jnp.full((1, Cp), -1e30, jnp.float32).at[0, :C].set(b2.astype(jnp.float32))

    # --- batch tiling: VMEM-budget-aware, multiple of 8, ragged last block ----
    if tile_b is None:
        resident = (F * Hp + Hp * Cp) * 2 + (Hp + Cp) * 4      # weights + biases
        budget = max(vmem_limit_bytes - resident - (2 << 20), 1 << 20)
        # double-buffered x (bf16) + double-buffered out (f32) + f32 intermediates
        per_row = 2 * F * 2 + 2 * C * 4 + (2 * Hp + 3 * Cp) * 4
        cap = 2048 if F <= 512 else 1024
        tile_b = min(cap, budget // per_row, _round_up(B, 8))
    tile_b = max(8, int(tile_b) // 8 * 8)

    grid = (pl.cdiv(B, tile_b),)   # ragged final block: no explicit batch padding

    flops = 2 * B * (F * Hp + Hp * Cp)
    bytes_accessed = int(
        B * F * 2                                   # x read (bf16)
        + B * C * 4                                 # out write (f32, narrow)
        + (F * Hp + Hp * Cp) * 2                    # bf16 weights
        + (Hp + Cp) * 4                             # f32 biases
    )

    out = pl.pallas_call(
        _mlp_softmax_kernel,
        out_shape=jax.ShapeDtypeStruct((B, C), jnp.float32),
        grid_spec=pltpu.PrefetchScalarGridSpec(
            num_scalar_prefetch=0,
            grid=grid,
            in_specs=[
                pl.BlockSpec((tile_b, F), lambda i: (i, 0)),   # x tile (pipelined)
                pl.BlockSpec((F, Hp), lambda i: (0, 0)),       # W1 (resident)
                pl.BlockSpec((1, Hp), lambda i: (0, 0)),       # b1
                pl.BlockSpec((Hp, Cp), lambda i: (0, 0)),      # W2 (resident)
                pl.BlockSpec((1, Cp), lambda i: (0, 0)),       # b2
            ],
            out_specs=pl.BlockSpec((tile_b, C), lambda i: (i, 0)),  # narrow out
        ),
        compiler_params=pltpu.CompilerParams(
            dimension_semantics=("parallel",),
            vmem_limit_bytes=vmem_limit_bytes,
        ),
        cost_estimate=pl.CostEstimate(
            flops=flops,
            transcendentals=B * Cp,
            bytes_accessed=bytes_accessed,
        ),
    )(x, w1p, b1p, w2p, b2p)

    return out


def _init_linear(key, fan_in, fan_out):
    # Deterministic init mimicking nn.Linear default (uniform +/- 1/sqrt(fan_in)).
    kw, kb = jax.random.split(key)
    bound = 1.0 / jnp.sqrt(jnp.float32(fan_in))
    w = jax.random.uniform(kw, (fan_in, fan_out), jnp.float32, -bound, bound)
    b = jax.random.uniform(kb, (fan_out,), jnp.float32, -bound, bound)
    return w, b


if __name__ == "__main__":
    key = jax.random.PRNGKey(0)
    k_x, k_l1, k_l2 = jax.random.split(key, 3)

    batch = 10          # deliberately not a multiple of 8 to exercise the ragged block
    num_features = 32
    class_num = 10

    x = jax.random.normal(k_x, (batch, num_features), jnp.float32)
    w1, b1 = _init_linear(k_l1, num_features, HIDDEN)
    w2, b2 = _init_linear(k_l2, HIDDEN, class_num)

    out = pytorch_multiclass_forward(x, w1, b1, w2, b2)
    out = jax.block_until_ready(out)

    # Reference check in plain JAX (eval-mode forward pass).  Tolerance accounts
    # for bf16 matmul operands (f32 accumulation) in the kernel.
    h_ref = jnp.maximum(x @ w1 + b1, 0.0)
    logits_ref = h_ref @ w2 + b2
    ref = jax.nn.softmax(logits_ref, axis=1)

    assert out.shape == (batch, class_num)
    assert bool(jnp.all(jnp.isfinite(out)))
    assert jnp.allclose(out, ref, atol=2e-2, rtol=2e-2)
    assert jnp.allclose(jnp.sum(out, axis=1), 1.0, atol=1e-5)

    print("KERNEL_OK")
</pallas_src>

<mosaic_0001>
module attributes {stable_mosaic.version = 11 : i64} {
  func.func @_mlp_softmax_kernel(%arg0: i32, %arg1: memref<16x32xbf16, #tpu.memory_space<vmem>>, %arg2: memref<32x128xbf16, #tpu.memory_space<vmem>>, %arg3: memref<1x128xf32, #tpu.memory_space<vmem>>, %arg4: memref<128x128xbf16, #tpu.memory_space<vmem>>, %arg5: memref<1x128xf32, #tpu.memory_space<vmem>>, %arg6: memref<16x10xf32, #tpu.memory_space<vmem>>) attributes {dimension_semantics = [#tpu.dimension_semantics<parallel>], iteration_bounds = array<i64: 1>, scalar_prefetch = 0 : i64, scratch_operands = 0 : i64, tpu.core_type = #tpu.core_type<tc>, window_params = [{transform_indices = @transform_0, window_bounds = array<i64: 16, 32>}, {pipeline_mode = #tpu.pipeline_mode<synchronous>, transform_indices = @transform_1, window_bounds = array<i64: 32, 128>}, {pipeline_mode = #tpu.pipeline_mode<synchronous>, transform_indices = @transform_2, window_bounds = array<i64: 1, 128>}, {pipeline_mode = #tpu.pipeline_mode<synchronous>, transform_indices = @transform_3, window_bounds = array<i64: 128, 128>}, {pipeline_mode = #tpu.pipeline_mode<synchronous>, transform_indices = @transform_4, window_bounds = array<i64: 1, 128>}, {transform_indices = @transform_5, window_bounds = array<i64: 16, 10>}]} {
    %c0 = arith.constant 0 : index
    %c0_0 = arith.constant 0 : index
    %0 = vector.load %arg1[%c0, %c0_0] : memref<16x32xbf16, #tpu.memory_space<vmem>>, vector<16x32xbf16>
    %c0_1 = arith.constant 0 : index
    %c0_2 = arith.constant 0 : index
    %1 = vector.load %arg2[%c0_1, %c0_2] : memref<32x128xbf16, #tpu.memory_space<vmem>>, vector<32x128xbf16>
    %cst = arith.constant dense<0.000000e+00> : vector<16x128xf32>
    %2 = tpu.matmul %0, %1, %cst {dimension_numbers = #tpu.dot_dimension_numbers<[1], [0], [0], [1], [0, 0, 1, 1], [], []>} : vector<16x32xbf16>, vector<32x128xbf16>, vector<16x128xf32> -> vector<16x128xf32>
    %c0_3 = arith.constant 0 : index
    %c0_4 = arith.constant 0 : index
    %3 = vector.load %arg3[%c0_3, %c0_4] : memref<1x128xf32, #tpu.memory_space<vmem>>, vector<1x128xf32>
    %4 = vector.broadcast %3 : vector<1x128xf32> to vector<16x128xf32>
    %5 = arith.addf %2, %4 : vector<16x128xf32>
    %cst_5 = arith.constant 0.000000e+00 : f32
    %6 = vector.broadcast %cst_5 : f32 to vector<16x128xf32>
    %7 = arith.maximumf %5, %6 : vector<16x128xf32>
    %8 = arith.truncf %7 : vector<16x128xf32> to vector<16x128xbf16>
    %c0_6 = arith.constant 0 : index
    %c0_7 = arith.constant 0 : index
    %9 = vector.load %arg4[%c0_6, %c0_7] : memref<128x128xbf16, #tpu.memory_space<vmem>>, vector<128x128xbf16>
    %cst_8 = arith.constant dense<0.000000e+00> : vector<16x128xf32>
    %10 = tpu.matmul %8, %9, %cst_8 {dimension_numbers = #tpu.dot_dimension_numbers<[1], [0], [0], [1], [0, 0, 1, 1], [], []>} : vector<16x128xbf16>, vector<128x128xbf16>, vector<16x128xf32> -> vector<16x128xf32>
    %c0_9 = arith.constant 0 : index
    %c0_10 = arith.constant 0 : index
    %11 = vector.load %arg5[%c0_9, %c0_10] : memref<1x128xf32, #tpu.memory_space<vmem>>, vector<1x128xf32>
    %12 = vector.broadcast %11 : vector<1x128xf32> to vector<16x128xf32>
    %13 = arith.addf %10, %12 : vector<16x128xf32>
    %cst_11 = arith.constant dense<0xFF800000> : vector<16xf32>
    %14 = vector.multi_reduction <maximumf>, %13, %cst_11 [1] : vector<16x128xf32> to vector<16xf32>
    %15 = vector.shape_cast %14 : vector<16xf32> to vector<16x1xf32>
    %16 = vector.broadcast %15 : vector<16x1xf32> to vector<16x128xf32>
    %17 = arith.subf %13, %16 : vector<16x128xf32>
    %18 = math.exp %17 : vector<16x128xf32>
    %cst_12 = arith.constant dense<0.000000e+00> : vector<16xf32>
    %19 = vector.multi_reduction <add>, %18, %cst_12 [1] : vector<16x128xf32> to vector<16xf32>
    %20 = vector.shape_cast %19 : vector<16xf32> to vector<16x1xf32>
    %21 = vector.broadcast %20 : vector<16x1xf32> to vector<16x128xf32>
    %22 = arith.divf %18, %21 : vector<16x128xf32>
    %23 = vector.extract_strided_slice %22 {offsets = [0, 0], sizes = [16, 10], strides = [1, 1]} : vector<16x128xf32> to vector<16x10xf32>
    %c0_13 = arith.constant 0 : index
    %c0_14 = arith.constant 0 : index
    %24 = vector.load %arg6[%c0_13, %c0_14] : memref<16x10xf32, #tpu.memory_space<vmem>>, vector<16x10xf32>
    tpu.vector_store %arg6[%c0_13, %c0_14], %23 {strides = array<i32>} : memref<16x10xf32, #tpu.memory_space<vmem>>, vector<16x10xf32>,
    return
  }
  func.func @transform_0(%arg0: i32) -> (i32, i32) {
    %c0_i32 = arith.constant 0 : i32
    %c0_i32_0 = arith.constant 0 : i32
    return %arg0, %c0_i32 : i32, i32
  }
  func.func @transform_1(%arg0: i32) -> (i32, i32) {
    %c0_i32 = arith.constant 0 : i32
    %c0_i32_0 = arith.constant 0 : i32
    %c0_i32_1 = arith.constant 0 : i32
    return %c0_i32, %c0_i32_0 : i32, i32
  }
  func.func @transform_2(%arg0: i32) -> (i32, i32) {
    %c0_i32 = arith.constant 0 : i32
    %c0_i32_0 = arith.constant 0 : i32
    %c0_i32_1 = arith.constant 0 : i32
    return %c0_i32, %c0_i32_0 : i32, i32
  }
  func.func @transform_3(%arg0: i32) -> (i32, i32) {
    %c0_i32 = arith.constant 0 : i32
    %c0_i32_0 = arith.constant 0 : i32
    %c0_i32_1 = arith.constant 0 : i32
    return %c0_i32, %c0_i32_0 : i32, i32
  }
  func.func @transform_4(%arg0: i32) -> (i32, i32) {
    %c0_i32 = arith.constant 0 : i32
    %c0_i32_0 = arith.constant 0 : i32
    %c0_i32_1 = arith.constant 0 : i32
    return %c0_i32, %c0_i32_0 : i32, i32
  }
  func.func @transform_5(%arg0: i32) -> (i32, i32) {
    %c0_i32 = arith.constant 0 : i32
    %c0_i32_0 = arith.constant 0 : i32
    return %arg0, %c0_i32 : i32, i32
  }
}

</mosaic_0001>

<bundles_post_ra>
// kernel: tpu_custom_call.1
= control target key start
LH: loop header
LB: loop body
LE: loop exit
PB: predicated region body
PF: predicated region fallthrough
CT: control target
= control target key end

     0   :  { %10 = vsyncpa [#allocation3], 0  ;;  %s500_s0 = inlined_call_operand.hbm [shape: bf16[10,32], index: 0, kind: input, shape index: {}]   ;;  %s501_s1 = inlined_call_operand.hbm [shape: bf16[32,128], index: 1, kind: input, shape index: {}]   ;;  %s502_s2 = inlined_call_operand.vmem [shape: f32[1,128], index: 2, kind: input, shape index: {}]   ;;  %s503_s3 = inlined_call_operand.hbm [shape: bf16[128,128], index: 3, kind: input, shape index: {}]   ;;  %s504_s4 = inlined_call_operand.vmem [shape: f32[1,128], index: 4, kind: input, shape index: {}]   ;;  %s505_s5 = inlined_call_operand.hbm [shape: f32[10,10], index: 5, kind: output, shape index: {}]  }
   0x1   :  { %11 = vsyncpa [#allocation6], 0 }
   0x2   :  { %12 = vsyncpa [#allocation4], 0  ;;  %s30_s20 = sshll.u32 %s501_s1, 4  ;;  %s442_s21 = smov [#allocation5]   ;;  %s31_s20 = int_to_ptr.hbm [resolvable:$true] %s30_s20 }
   0x3   :  { %s32_s22 = sshll.u32 %s442_s21, 4  ;;  %s17_s25 = sshll.u32 %s500_s0, 4  ;;  %s33_s22 = int_to_ptr.vmem [resolvable:$true] %s32_s22  ;;  %s18_s25 = int_to_ptr.hbm [resolvable:$true] %s17_s25 }
   0x4   :  { %s443_s26 = smov 64   ;;  %s444_s27 = smov 4  }
   0x5   :  { %38 = dma.hbm_to_vmem [thread:$0]  %s31_s20, 256, %s33_s22, [#allocation6], %s443_s26, %s443_s26, %s444_s27  }
   0x6   :  { %s445_s28 = smov [#allocation2]   ;;  %s45_s7 = sshll.u32 %s503_s3, 4  ;;  %s46_s7 = int_to_ptr.hbm [resolvable:$true] %s45_s7 }
   0x7   :  { %s19_s29 = sshll.u32 %s445_s28, 4  ;;  %s446_s1 = smov [#allocation7]   ;;  %s20_s29 = int_to_ptr.vmem [resolvable:$true] %s19_s29 }
   0x8   :  { %25 = dma.hbm_to_vmem [thread:$0]  %s18_s25, 128, %s20_s29, [#allocation3], %s443_s26, %s443_s26, %s444_s27  }
   0x9   :  { %s47_s8 = sshll.u32 %s446_s1, 4  ;;  %s48_s8 = int_to_ptr.vmem [resolvable:$true] %s47_s8 }
   0xa   :  { %53 = dma.hbm_to_vmem [thread:$0]  %s46_s7, 1024, %s48_s8, [#allocation6], %s443_s26, %s443_s26, %s444_s27  }
   0xb   :  { %436 = dma.done.wait [#allocation3], 128  }
   0xc   :  { %437 = vsyncadd [#allocation3], 4294967168 }
   0xd   :  { %438 = dma.done.wait [#allocation6], 1280  }
   0xe   :  { %439 = vsyncadd [#allocation6], 4294966016  ;;  %v313_v0 = vld [vmem:[#allocation5 + $0x8] sm:$0xff]  ;;  %v312_v2 = vld [vmem:[#allocation5] sm:$0xff]  ;;  %vm96_vm0 = vcmask 261120   ;;  %vm243_vm5 = vcmask 80896  }
   0xf   :  { %v321_v1 = vld [vmem:[#allocation7 + $0x38] sm:$0xff]  ;;  %106 = vmatpush.bf16.msra.mxu0 %v313_v0  ;;  %v320_v3 = vld [vmem:[#allocation7 + $0x30] sm:$0xff]  ;;  %v311_v4 = vld [vmem:[#allocation2] sm:$0xff]  ;;  %s252_s13 = sshll.u32 %s505_s5, 4  ;;  %s448_s14 = smov 128   ;;  %s253_s13 = int_to_ptr.hbm [resolvable:$true] %s252_s13 }
  0x10   :  { %185 = vmatpush.bf16.msra.mxu1 %v321_v1  ;;  %v319_v5 = vld [vmem:[#allocation7 + $0x28] sm:$0xff]  ;;  %v318_v6 = vld [vmem:[#allocation7 + $0x20] sm:$0xff]  ;;  %v317_v7 = vld [vmem:[#allocation7 + $0x18] sm:$0xff]  ;;  %s449_s15 = smov 8  }
  0x11   :  { %v316_v8 = vld [vmem:[#allocation7 + $0x10] sm:$0xff]  ;;  %v315_v9 = vld [vmem:[#allocation7 + $0x8] sm:$0xff]  ;;  %v314_v10 = vld [vmem:[#allocation7] sm:$0xff] }
  0x12   :  { %v330_v12 = vld [vmem:[%s502_s2] ss:$0 sm:$0xff]  ;;  %s447_s2 = smov [#allocation8]  }
  0x13   :  { %107 = vmatpush.bf16.msra.mxu0 %v312_v2  ;;  %v331_v19 = vld [vmem:[%s504_s4] ss:$0 sm:$0xff]  ;;  %s250_s4 = sshll.u32 %s447_s2, 4  ;;  %s251_s4 = int_to_ptr.vmem [resolvable:$true] %s250_s4 }
  0x14   :  { %186 = vmatpush.bf16.msra.mxu1 %v320_v3 }
  0x16   :  { %278 = vmatmul.msk.bf16.vlgmr.msra.gmra.mxu0 %vm96_vm0, %v311_v4 }
  0x18   :  { %187 = vmatpush.bf16.msra.mxu1 %v319_v5 }
  0x1c   :  { %188 = vmatpush.bf16.msra.mxu1 %v318_v6 }
  0x20   :  { %189 = vmatpush.bf16.msra.mxu1 %v317_v7 }
  0x24   :  { %190 = vmatpush.bf16.msra.mxu1 %v316_v8 }
  0x28   :  { %191 = vmatpush.bf16.msra.mxu1 %v315_v9 }
  0x2c   :  { %192 = vmatpush.bf16.msra.mxu1 %v314_v10 }
  0x93   :  { %v109_v11 = vpop.f32.mrf.mxu0 }
  0x94   :  { %v110_v13 = vadd.f32 %v330_v12, %v109_v11 }
  0x96   :  { %v114_v16 = vmax.f32 %v110_v13, 0.0 }
  0x9b   :  { %v111_v14 = vpop.f32.mrf.mxu0 }
  0x9c   :  { %v112_v15 = vadd.f32 %v330_v12, %v111_v14 }
  0x9e   :  { %v115_v17 = vmax.f32 %v112_v15, 0.0 }
  0xa0   :  { %v116_v18 = vpack.c.bf16 %v115_v17, %v114_v16 }
  0xa2   :  { %193 = vmatmul.bf16.vlgmr.msra.gmra.mxu1 %v116_v18 }
 0x11f   :  { %v194_v20 = vpop.f32.mrf.mxu1 }
 0x120   :  { %v195_v21 = vadd.f32 %v331_v19, %v194_v20 }
 0x122   :  { %199 = vmax.xlane.f32.xlu0 %v195_v21 }
 0x127   :  { %v196_v22 = vpop.f32.mrf.mxu1 }
 0x128   :  { %v197_v23 = vadd.f32 %v331_v19, %v196_v22 }
 0x12a   :  { %201 = vmax.xlane.f32.xlu0 %v197_v23 }
 0x195   :  { %v200_v24 = vpop.xlane.xlu0 %199 }
 0x196   :  { %v203_v25 = vsub.f32 %v195_v21, %v200_v24 }
 0x198   :  { %v205_v26 = vmul.f32 1.442695, %v203_v25 }
 0x19a   :  { %332 = vpow2.f32 %v205_v26 }
 0x19d   :  { %v202_v27 = vpop.xlane.xlu0 %201 }
 0x19e   :  { %v204_v28 = vsub.f32 %v197_v23, %v202_v27 }
 0x1a0   :  { %v333_v29 = vpop.eup %332  ;;  %v207_v30 = vmul.f32 1.442695, %v204_v28 }
 0x1a1   :  { %209 = vadd.xlane.f32.xlu1 %v333_v29 }
 0x1a2   :  { %334 = vpow2.f32 %v207_v30 }
 0x1a8   :  { %v335_v31 = vpop.eup %334 }
 0x1a9   :  { %211 = vadd.xlane.f32.xlu1 %v335_v31 }
 0x214   :  { %v210_v32 = vpop.xlane.xlu1 %209 }
 0x215   :  { %336 = vrcp.f32 %v210_v32  ;;  %v224_v37 = vand.u32 2147483648, %v210_v32  ;;  %v222_v39 = vand.u32 2147483647, %v210_v32  ;;  %vm218_vm2 = vweird.f32 %v210_v32 }
 0x217   :  { %v225_v42 = vor.u32 1.1754944e-38, %v224_v37  ;;  %vm223_vm4 = vcmp.eq.f32.partialorder %v222_v39, 8.507059e+37 }
 0x21b   :  { %v337_v33 = vpop.eup %336 }
 0x21c   :  { %v214_v34 = vmul.f32 %v337_v33, %v210_v32  ;;  %v212_v35 = vpop.xlane.xlu1 %211  ;;  %vm219_vm1 = vweird.f32 %v337_v33 }
 0x21d   :  { %338 = vrcp.f32 %v212_v35  ;;  %vm220_vm3 = vmor %vm218_vm2, %vm219_vm1  ;;  %v239_v48 = vand.u32 2147483648, %v212_v35  ;;  %v237_v50 = vand.u32 2147483647, %v212_v35  ;;  %vm233_vm7 = vweird.f32 %v212_v35 }
 0x21e   :  { %v215_v36 = vsub.f32 1.0, %v214_v34 }
 0x21f   :  { %v240_v52 = vor.u32 1.1754944e-38, %v239_v48  ;;  %vm238_vm9 = vcmp.eq.f32.partialorder %v237_v50, 8.507059e+37 }
 0x220   :  { %v216_v38 = vmul.f32 %v337_v33, %v215_v36 }
 0x222   :  { %v217_v40 = vadd.f32 %v337_v33, %v216_v38 }
 0x223   :  { %v339_v41 = vpop.eup %338 }
 0x224   :  { %v221_v43 = vsel %vm220_vm3, %v337_v33, %v217_v40  ;;  %v229_v44 = vmul.f32 %v339_v41, %v212_v35  ;;  %vm234_vm6 = vweird.f32 %v339_v41 }
 0x225   :  { %v226_v45 = vsel %vm223_vm4, %v225_v42, %v221_v43  ;;  %vm235_vm8 = vmor %vm233_vm7, %vm234_vm6 }
 0x226   :  { %v227_v46 = vmul.f32 %v333_v29, %v226_v45  ;;  %v230_v47 = vsub.f32 1.0, %v229_v44 }
 0x228   :  { %v231_v49 = vmul.f32 %v339_v41, %v230_v47  ;;  %244 = vst.msk [vmem:[#allocation8] sm:$0xff] %vm243_vm5, %v227_v46 }
 0x22a   :  { %v232_v51 = vadd.f32 %v339_v41, %v231_v49 }
 0x22c   :  { %v236_v53 = vsel %vm235_vm8, %v339_v41, %v232_v51 }
 0x22d   :  { %v241_v54 = vsel %vm238_vm9, %v240_v52, %v236_v53 }
 0x22e   :  { %v242_v55 = vmul.f32 %v335_v31, %v241_v54 }
 0x230   :  { %245 = vst.msk [vmem:[#allocation8 + $0x8] sm:$0xff] %vm243_vm5, %v242_v55 }
 0x231   :  { %258 = dma.vmem_to_hbm [thread:$0]  %s251_s4, 256, %s253_s13, [#allocation4], %s448_s14, %s448_s14, %s449_s15  }
 0x232   :  { %440 = dma.done.wait [#allocation4], 256  }
 0x233   :  { %441 = vsyncadd [#allocation4], 4294967040 }
 0x234   :  { %263 = vsyncpa [#allocation3], 1 }
 0x235   :  { %264 = vsyncpa [#allocation6], 1 }
 0x236   :  { %265 = vsyncpa [#allocation4], 1 }

</bundles_post_ra>
